<compile_context>
chip_gen: v7x
topology: tpu7x:2x2x1
jax: 0.10.0
libtpu: 0.0.40
codegen_flags: <defaults>
</compile_context>

<pallas_src>
import functools

import jax
import jax.numpy as jnp
from jax.experimental import pallas as pl
from jax.experimental.pallas import tpu as pltpu

MAX_LENGTH = 512          # self.max_length in the PyTorch module
D = 128                   # embedding dim (DPR uses 768; scaled down for the demo)
VOCAB = 32
TYPE_VOCAB = 2
SUBLANE = 16              # pad batch to the bf16 sublane tile (fully packed MXU LHS)
TN_MAX = 4096             # passage tile cap along N (multiple of 128).
                          # v7x: keep 2*(TN*D*2B) double-buffer well inside 64 MiB VMEM/TC
                          # (TN~4096 at D=768).  v5e/v6e: can go larger with a higher
                          # vmem_limit_bytes (~96 MiB) since physical VMEM is 128 MiB.
MIN_GRID = 8              # keep >= 8 grid steps when possible so v7x megacore stays balanced
VMEM_LIMIT = 48 * 1024 * 1024   # <= ~48 MiB: safe on v7x; raise toward ~96 MiB on v5e/v6e.


# ---------------------------------------------------------------------------
# Pallas kernels
# ---------------------------------------------------------------------------

def pooler_kernel(h_ref, w_ref, b_ref, qf32_ref, qbf16_ref):
    # h: [B_pad, D] f32, w: [D, D] f32, b: [1, D] f32 -> tanh(h @ w + b)
    # Emits both the f32 question embeddings (returned to the caller, as in the PyTorch
    # module) and their bf16 copy (fed straight to the scoring kernel, no extra XLA cast).
    z = jnp.dot(h_ref[...], w_ref[...], preferred_element_type=jnp.float32)
    q = jnp.tanh(z + b_ref[...])
    qf32_ref[...] = q
    qbf16_ref[...] = q.astype(jnp.bfloat16)


def score_topk_kernel(q_ref, p_ref, vals_ref, idx_ref, *, tn, k):
    # q: [B_pad, D] bf16 (VMEM-resident across all tiles)
    # p: [D, TN] bf16   (one streamed tile of the pre-transposed index; MXU weight layout)
    # Outputs (per grid step j): vals [1, B_pad, K] f32, idx [1, B_pad, K] i32 — the per-tile
    # top-K inner products and their GLOBAL passage indices.  The full [B_pad, TN] score tile
    # never leaves VMEM.
    j = pl.program_id(0)
    base = j * tn

    s = jnp.dot(q_ref[...], p_ref[...],
                preferred_element_type=jnp.float32)            # [B_pad, TN] f32 (MXU)

    col = jax.lax.broadcasted_iota(jnp.int32, s.shape, 1)       # lane index within the tile
    val_cols = []
    idx_cols = []
    # K unrolled max / first-argmax / mask passes.  These run on the VPU/XLU under the
    # DMA slack of the next passage tile, so they are effectively free on a mem-bound scan.
    for _ in range(k):
        m = jnp.max(s, axis=-1, keepdims=True)                  # [B_pad, 1]
        hit = s == m
        am = jnp.min(jnp.where(hit, col, tn), axis=-1,
                     keepdims=True)                              # first (lowest-index) argmax
        val_cols.append(m)
        idx_cols.append(am + base)                               # global passage index
        s = jnp.where(col == am, -jnp.inf, s)                    # knock out the selected column

    vals_ref[0] = jnp.concatenate(val_cols, axis=-1)             # [B_pad, K]
    idx_ref[0] = jnp.concatenate(idx_cols, axis=-1)              # [B_pad, K]


# ---------------------------------------------------------------------------
# pallas_call wrappers
# ---------------------------------------------------------------------------

def _pooler_call(pooled_pad, w, b):
    B_pad, d = pooled_pad.shape
    vmem = pl.BlockSpec(memory_space=pltpu.MemorySpace.VMEM)
    q_f32, q_bf16 = pl.pallas_call(
        pooler_kernel,
        out_shape=(jax.ShapeDtypeStruct((B_pad, d), jnp.float32),
                   jax.ShapeDtypeStruct((B_pad, d), jnp.bfloat16)),
        in_specs=[vmem, vmem, vmem],
        out_specs=(vmem, vmem),
    )(pooled_pad, w, b)
    return q_f32, q_bf16


def _choose_passage_tile(n, topk, tn_max=TN_MAX, min_grid=MIN_GRID):
    # Largest multiple of 128 that divides N and is <= tn_max, preferring tiles that keep
    # the grid length >= min_grid (megacore balance on v7x).
    cands = [t for t in range(128, min(tn_max, n) + 1, 128) if n % t == 0]
    assert cands, "demo keeps the passage count a multiple of 128"
    pref = [t for t in cands if n // t >= min_grid]
    tn = max(pref) if pref else max(cands)
    assert topk <= tn, "topk must fit inside one passage tile"
    return tn


def _score_topk_call(q_bf16, passages_t_bf16, topk, tn):
    B_pad, d = q_bf16.shape
    d2, n = passages_t_bf16.shape
    assert d == d2 and n % tn == 0
    n_tiles = n // tn
    kernel = functools.partial(score_topk_kernel, tn=tn, k=topk)
    vals, idx = pl.pallas_call(
        kernel,
        out_shape=(jax.ShapeDtypeStruct((n_tiles, B_pad, topk), jnp.float32),
                   jax.ShapeDtypeStruct((n_tiles, B_pad, topk), jnp.int32)),
        grid_spec=pltpu.PrefetchScalarGridSpec(
            num_scalar_prefetch=0,
            grid=(n_tiles,),
            in_specs=[
                # q is tiny: same block every step -> stays VMEM-resident (no re-DMA).
                pl.BlockSpec((B_pad, d), lambda j: (0, 0)),
                # stream the pre-transposed index one [D, tn] tile per step (double-buffered).
                pl.BlockSpec((d, tn), lambda j: (0, j)),
            ],
            out_specs=(pl.BlockSpec((1, B_pad, topk), lambda j: (j, 0, 0)),
                       pl.BlockSpec((1, B_pad, topk), lambda j: (j, 0, 0))),
        ),
        compiler_params=pltpu.CompilerParams(
            # independent N-tiles -> shard across the 2 TensorCores on v7x.
            dimension_semantics=("parallel",),
            vmem_limit_bytes=VMEM_LIMIT,
        ),
    )(q_bf16, passages_t_bf16)
    return vals, idx


# ---------------------------------------------------------------------------
# Model wrapper (glue in plain JAX, hot paths in Pallas)
# ---------------------------------------------------------------------------

def init_params(key, n_passages=16384):
    k1, k2, k3, k4, k5 = jax.random.split(key, 5)
    passages = jax.random.normal(k5, (n_passages, D), jnp.float32)
    return {
        "tok_emb": jax.random.normal(k1, (VOCAB, D), jnp.float32) * 0.02,
        "typ_emb": jax.random.normal(k2, (TYPE_VOCAB, D), jnp.float32) * 0.02,
        "pooler_w": jax.random.normal(k3, (D, D), jnp.float32) * 0.02,
        "pooler_b": jax.random.normal(k4, (1, D), jnp.float32) * 0.02,
        # indexed_passages.embeddings, stored pre-transposed [D, N] bf16 (one-time, at index
        # build): bf16 halves HBM bytes on the bandwidth-bound scan and is the native MXU
        # input dtype; the [D, N] orientation avoids any per-tile transpose in the kernel.
        "passages_t": passages.T.astype(jnp.bfloat16),
    }


def encode_questions(input_ids, token_type_ids, params):
    # encoder(...).pooler_output (synthetic): lookup + mean pool (glue),
    # pooler dense + tanh + bf16 cast in one Pallas kernel; batch padded to 16 rows
    # (bf16 sublane tile) so the downstream MXU LHS is a fully packed vreg.
    tok = params["tok_emb"][input_ids]            # [B, S, D]
    typ = params["typ_emb"][token_type_ids]       # [B, S, D]
    pooled = jnp.mean(tok + typ, axis=1)          # [B, D]
    B = pooled.shape[0]
    B_pad = ((B + SUBLANE - 1) // SUBLANE) * SUBLANE
    pooled_pad = jnp.pad(pooled, ((0, B_pad - B), (0, 0)))
    q_f32_pad, q_bf16_pad = _pooler_call(pooled_pad, params["pooler_w"], params["pooler_b"])
    return q_f32_pad, q_bf16_pad, B


def posterior_forward(input_ids, token_type_ids, params, topk):
    input_ids = input_ids[:, :MAX_LENGTH]
    token_type_ids = token_type_ids[:, :MAX_LENGTH]

    q_f32_pad, q_bf16_pad, B = encode_questions(input_ids, token_type_ids, params)
    B_pad = q_f32_pad.shape[0]
    n_passages = params["passages_t"].shape[1]

    # indexed_passages.retrieve(question_embeddings, topk):
    # fused bf16 scoring + per-tile partial top-k over the streamed index.
    tn = _choose_passage_tile(n_passages, topk)
    vals, idx = _score_topk_call(q_bf16_pad, params["passages_t"], topk, tn)
    # vals/idx: [n_tiles, B_pad, K] -> per-row candidate lists of length n_tiles*K.
    cand_vals = jnp.transpose(vals, (1, 0, 2)).reshape(B_pad, -1)[:B]
    cand_idx = jnp.transpose(idx, (1, 0, 2)).reshape(B_pad, -1)[:B]

    # TODO(synk): the final cross-tile merge has no clean Pallas equivalent; it is a tiny
    # lax.top_k over n_tiles*K candidates per row (hundreds of x smaller than the full index).
    # logits == top-k inner-product score values: the original gather + torch.bmm recomputes
    # exactly <q_b, passage_idx>, so no separate gather/bmm kernel is needed.
    logits, pos = jax.lax.top_k(cand_vals, topk)                  # [B, K]
    retrieved_indices = jnp.take_along_axis(cand_idx, pos, axis=1)

    return logits, retrieved_indices.astype(jnp.int32), q_f32_pad[:B]


# ---------------------------------------------------------------------------
# Main
# ---------------------------------------------------------------------------

if __name__ == "__main__":
    key = jax.random.PRNGKey(0)
    kp, ki, kt = jax.random.split(key, 3)

    B, S, N, TOPK = 4, 8, 16384, 8
    params = init_params(kp, n_passages=N)
    input_ids = jax.random.randint(ki, (B, S), 0, VOCAB, dtype=jnp.int32)
    token_type_ids = jax.random.randint(kt, (B, S), 0, TYPE_VOCAB, dtype=jnp.int32)

    logits, retrieved_indices, q_emb = posterior_forward(
        input_ids, token_type_ids, params, TOPK
    )
    jax.block_until_ready((logits, retrieved_indices, q_emb))

    # Reference check in plain JAX (same math, no Pallas).
    tok = params["tok_emb"][input_ids]
    typ = params["typ_emb"][token_type_ids]
    pooled = jnp.mean(tok + typ, axis=1)
    q_ref = jnp.tanh(
        jnp.dot(pooled, params["pooler_w"], precision=jax.lax.Precision.HIGHEST)
        + params["pooler_b"])
    assert jnp.allclose(q_emb, q_ref, atol=2e-4), "pooler mismatch"

    # Score reference uses the kernel's own bf16-rounded q (value-based checks: exact index
    # equality is fragile under tied / near-tied scores and accumulation-order differences).
    p_f32 = params["passages_t"].astype(jnp.float32)                  # [D, N]
    scores_ref = jnp.dot(q_emb.astype(jnp.bfloat16).astype(jnp.float32), p_f32,
                         precision=jax.lax.Precision.HIGHEST)          # [B, N]
    vals_ref, _ = jax.lax.top_k(scores_ref, TOPK)
    assert jnp.allclose(logits, vals_ref, atol=1e-3, rtol=1e-3), "top-k values mismatch"
    gathered = jnp.take_along_axis(scores_ref, retrieved_indices, axis=1)
    assert jnp.allclose(gathered, logits, atol=1e-3, rtol=1e-3), "retrieved indices mismatch"

    print("KERNEL_OK")
</pallas_src>

<mosaic_0001>
module attributes {stable_mosaic.version = 11 : i64} {
  func.func @pooler_kernel(%arg0: memref<16x128xf32, #tpu.memory_space<vmem>>, %arg1: memref<128x128xf32, #tpu.memory_space<vmem>>, %arg2: memref<1x128xf32, #tpu.memory_space<vmem>>, %arg3: memref<16x128xf32, #tpu.memory_space<vmem>>, %arg4: memref<16x128xbf16, #tpu.memory_space<vmem>>) attributes {dimension_semantics = [], scalar_prefetch = 0 : i64, scratch_operands = 0 : i64, tpu.core_type = #tpu.core_type<tc>} {
    %c0 = arith.constant 0 : index
    %c0_0 = arith.constant 0 : index
    %0 = vector.load %arg0[%c0, %c0_0] : memref<16x128xf32, #tpu.memory_space<vmem>>, vector<16x128xf32>
    %c0_1 = arith.constant 0 : index
    %c0_2 = arith.constant 0 : index
    %1 = vector.load %arg1[%c0_1, %c0_2] : memref<128x128xf32, #tpu.memory_space<vmem>>, vector<128x128xf32>
    %cst = arith.constant dense<0.000000e+00> : vector<16x128xf32>
    %2 = tpu.matmul %0, %1, %cst {dimension_numbers = #tpu.dot_dimension_numbers<[1], [0], [0], [1], [0, 0, 1, 1], [], []>} : vector<16x128xf32>, vector<128x128xf32>, vector<16x128xf32> -> vector<16x128xf32>
    %c0_3 = arith.constant 0 : index
    %c0_4 = arith.constant 0 : index
    %3 = vector.load %arg2[%c0_3, %c0_4] : memref<1x128xf32, #tpu.memory_space<vmem>>, vector<1x128xf32>
    %4 = vector.broadcast %3 : vector<1x128xf32> to vector<16x128xf32>
    %5 = arith.addf %2, %4 : vector<16x128xf32>
    %6 = math.tanh %5 : vector<16x128xf32>
    %c0_5 = arith.constant 0 : index
    %c0_6 = arith.constant 0 : index
    %7 = vector.load %arg3[%c0_5, %c0_6] : memref<16x128xf32, #tpu.memory_space<vmem>>, vector<16x128xf32>
    tpu.vector_store %arg3[%c0_5, %c0_6], %6 {strides = array<i32>} : memref<16x128xf32, #tpu.memory_space<vmem>>, vector<16x128xf32>,
    %8 = arith.truncf %6 : vector<16x128xf32> to vector<16x128xbf16>
    %c0_7 = arith.constant 0 : index
    %c0_8 = arith.constant 0 : index
    %9 = vector.load %arg4[%c0_7, %c0_8] : memref<16x128xbf16, #tpu.memory_space<vmem>>, vector<16x128xbf16>
    tpu.vector_store %arg4[%c0_7, %c0_8], %8 {strides = array<i32>} : memref<16x128xbf16, #tpu.memory_space<vmem>>, vector<16x128xbf16>,
    return
  }
}

</mosaic_0001>

<bundles_post_ra>
// kernel: tpu_custom_call.1
= control target key start
LH: loop header
LB: loop body
LE: loop exit
PB: predicated region body
PF: predicated region fallthrough
CT: control target
= control target key end

     0   :  { %10 = vsyncpa [#allocation3], 0  ;;  %s497_s0 = inlined_call_operand.hbm [shape: f32[16,128], index: 0, kind: input, shape index: {}]   ;;  %s498_s1 = inlined_call_operand.hbm [shape: f32[128,128], index: 1, kind: input, shape index: {}]   ;;  %s499_s2 = inlined_call_operand.vmem [shape: f32[1,128], index: 2, kind: input, shape index: {}]   ;;  %s500_s3 = inlined_call_operand.hbm [shape: f32[16,128], index: 3, kind: output, shape index: {0}]   ;;  %s501_s4 = inlined_call_operand.hbm [shape: bf16[16,128], index: 4, kind: output, shape index: {1}]  }
   0x1   :  { %11 = vsyncpa [#allocation6], 0 }
   0x2   :  { %12 = vsyncpa [#allocation4], 0 }
   0x3   :  { %13 = vsyncpa [#allocation9], 0  ;;  %s397_s15 = smov [#allocation2]   ;;  %s301_s19 = scalar_lea.hbm %s497_s0, 256 }
   0x4   :  { %s19_s16 = sshll.u32 %s397_s15, 4  ;;  %p302_p0 = scmp.ne.s32.totalorder %s497_s0, %s301_s19  ;;  %s20_s16 = int_to_ptr.vmem [resolvable:$true] %s19_s16 }
   0x5   :  { %p305_p1 = scmp.lt.u32.totalorder %s301_s19, %s497_s0 }
   0x7   :  { %p307_p2 = pnand %p305_p1, %p302_p0 }
   0x9   :  { %310 = shalt.err (!%p307_p2)
}
   0xa   :  { %s311_s24 = scalar_lea.vmem %s20_s16, 256  ;;  %p316_p4 = scmp.lt.s32.totalorder %s20_s16, %s20_s16 }
   0xb   :  { %p312_p3 = scmp.ne.s32.totalorder %s20_s16, %s311_s24  ;;  %p317_p5 = scmp.lt.s32.totalorder %s311_s24, %s311_s24 }
   0xd   :  { %p318_p6 = por %p317_p5, %p316_p4 }
   0xf   :  { %p319_p7 = pnand %p318_p6, %p312_p3 }
  0x11   :  { %322 = shalt.err (!%p319_p7)
}
  0x12   :  { %s398_s25 = smov 128   ;;  %s399_s26 = smov 8  }
  0x13   :  { %25 = dma.hbm_to_vmem [thread:$0]  %s497_s0, 256, %s20_s16, [#allocation3], %s398_s25, %s398_s25, %s399_s26  }
  0x14   :  { %s400_s29 = smov [#allocation5]   ;;  %s323_s7 = scalar_lea.hbm %s498_s1, 2048 }
  0x15   :  { %s31_s30 = sshll.u32 %s400_s29, 4  ;;  %p324_p8 = scmp.ne.s32.totalorder %s498_s1, %s323_s7  ;;  %s32_s30 = int_to_ptr.vmem [resolvable:$true] %s31_s30 }
  0x16   :  { %p327_p9 = scmp.lt.u32.totalorder %s323_s7, %s498_s1 }
  0x18   :  { %p329_p10 = pnand %p327_p9, %p324_p8 }
  0x1a   :  { %332 = shalt.err (!%p329_p10)
}
  0x1b   :  { %s333_s12 = scalar_lea.vmem %s32_s30, 2048  ;;  %p338_p12 = scmp.lt.s32.totalorder %s32_s30, %s32_s30 }
  0x1c   :  { %p334_p11 = scmp.ne.s32.totalorder %s32_s30, %s333_s12  ;;  %p339_p13 = scmp.lt.s32.totalorder %s333_s12, %s333_s12 }
  0x1e   :  { %p340_p0 = por %p339_p13, %p338_p12 }
  0x20   :  { %p341_p1 = pnand %p340_p0, %p334_p11 }
  0x22   :  { %344 = shalt.err (!%p341_p1)
}
  0x23   :  { %37 = dma.hbm_to_vmem [thread:$0]  %s498_s1, 2048, %s32_s30, [#allocation6], %s398_s25, %s398_s25, %s399_s26  }
  0x24   :  { %389 = dma.done.wait [#allocation3], 256  }
  0x25   :  { %390 = vsyncadd [#allocation3], 4294967040 }
  0x26   :  { %391 = dma.done.wait [#allocation6], 2048  }
  0x27   :  { %392 = vsyncadd [#allocation6], 4294965248  ;;  %v48_v0 = vld [vmem:[#allocation5] sm:$0xff]  ;;  %v49_v1 = vld [vmem:[#allocation5 + $0x8] sm:$0xff]  ;;  %s401_s15 = smov [#allocation7]   ;;  %s402_s17 = smov [#allocation8]  }
  0x28   :  { %v50_v2 = vld [vmem:[#allocation5 + $0x10] sm:$0xff]  ;;  %v257_v3 = vpack.c.bf16 %v49_v1, %v48_v0  ;;  %v51_v4 = vld [vmem:[#allocation5 + $0x18] sm:$0xff]  ;;  %v52_v6 = vld [vmem:[#allocation5 + $0x20] sm:$0xff]  ;;  %s165_s16 = sshll.u32 %s401_s15, 4  ;;  %s177_s18 = sshll.u32 %s402_s17, 4  ;;  %s166_s16 = int_to_ptr.vmem [resolvable:$true] %s165_s16  ;;  %s463_s18 = int_to_ptr.vmem [resolvable:$true] %s177_s18 }
  0x29   :  { %v261_v5 = vpack.c.bf16 %v51_v4, %v50_v2  ;;  %v53_v7 = vld [vmem:[#allocation5 + $0x28] sm:$0xff]  ;;  %v46_v9 = vld [vmem:[#allocation2] sm:$0xff]  ;;  %v55_v11 = vld [vmem:[#allocation5 + $0x38] sm:$0xff]  ;;  %s345_s19 = scalar_lea.vmem %s166_s16, 256  ;;  %p350_p3 = scmp.lt.s32.totalorder %s166_s16, %s166_s16 }
  0x2a   :  { %258 = vmatprep.subr.bf16.mxu0 %v257_v3  ;;  %v265_v8 = vpack.c.bf16 %v53_v7, %v52_v6  ;;  %v54_v10 = vld [vmem:[#allocation5 + $0x30] sm:$0xff]  ;;  %254 = vmatprep.mubr.f32.mxu0 %v46_v9  ;;  %v56_v13 = vld [vmem:[#allocation5 + $0x40] sm:$0xff]  ;;  %v57_v14 = vld [vmem:[#allocation5 + $0x48] sm:$0xff]  ;;  %p346_p2 = scmp.ne.s32.totalorder %s166_s16, %s345_s19  ;;  %p351_p4 = scmp.lt.s32.totalorder %s345_s19, %s345_s19 }
  0x2b   :  { %260 = vmatpush3.bf16.msra.mxu0 %v257_v3  ;;  %v269_v12 = vpack.c.bf16 %v55_v11, %v54_v10  ;;  %v273_v15 = vpack.c.bf16 %v57_v14, %v56_v13  ;;  %v58_v16 = vld [vmem:[#allocation5 + $0x50] sm:$0xff]  ;;  %v59_v17 = vld [vmem:[#allocation5 + $0x58] sm:$0xff]  ;;  %v60_v19 = vld [vmem:[#allocation5 + $0x60] sm:$0xff] }
  0x2c   :  { %262 = vmatprep.subr.bf16.mxu0 %v261_v5  ;;  %v277_v18 = vpack.c.bf16 %v59_v17, %v58_v16  ;;  %v61_v20 = vld [vmem:[#allocation5 + $0x68] sm:$0xff]  ;;  %v62_v22 = vld [vmem:[#allocation5 + $0x70] sm:$0xff]  ;;  %v63_v23 = vld [vmem:[#allocation5 + $0x78] sm:$0xff]  ;;  %p352_p5 = por %p351_p4, %p350_p3 }
  0x2d   :  { %v281_v21 = vpack.c.bf16 %v61_v20, %v60_v19  ;;  %v285_v24 = vpack.c.bf16 %v63_v23, %v62_v22  ;;  %v47_v25 = vld [vmem:[#allocation2 + $0x8] sm:$0xff]  ;;  %v194_v26 = vld [vmem:[%s499_s2] ss:$0 sm:$0xff] }
  0x2e   :  { %p353_p6 = pnand %p352_p5, %p346_p2 }
  0x2f   :  { %264 = vmatpush3.bf16.msra.mxu0 %v261_v5 }
  0x30   :  { %266 = vmatprep.subr.bf16.mxu0 %v265_v8 }
  0x33   :  { %268 = vmatpush3.bf16.msra.mxu0 %v265_v8 }
  0x34   :  { %270 = vmatprep.subr.bf16.mxu0 %v269_v12 }
  0x37   :  { %272 = vmatpush3.bf16.msra.mxu0 %v269_v12 }
  0x38   :  { %274 = vmatprep.subr.bf16.mxu0 %v273_v15 }
  0x3b   :  { %276 = vmatpush3.bf16.msra.mxu0 %v273_v15 }
  0x3c   :  { %278 = vmatprep.subr.bf16.mxu0 %v277_v18 }
  0x3f   :  { %280 = vmatpush3.bf16.msra.mxu0 %v277_v18 }
  0x40   :  { %282 = vmatprep.subr.bf16.mxu0 %v281_v21 }
  0x43   :  { %284 = vmatpush3.bf16.msra.mxu0 %v281_v21 }
  0x44   :  { %286 = vmatprep.subr.bf16.mxu0 %v285_v24 }
  0x47   :  { %288 = vmatpush3.bf16.msra.mxu0 %v285_v24 }
  0x4a   :  { %255 = vmatmul.mubr.f32.vlgmr.msra.gmra.mrb[0].mxu0 %v47_v25 }
 0x11d   :  { %v256_v27 = vpop.f32.mrb[0].mxu0 }
 0x11e   :  { %v143_v28 = vadd.f32 %v256_v27, %v194_v26  ;;  %v137_v29 = vpop.f32.mrb[1].mxu0 }
 0x11f   :  { %v138_v30 = vadd.f32 %v194_v26, %v137_v29 }
 0x120   :  { %297 = vtanh.f32 %v143_v28 }
 0x121   :  { %299 = vtanh.f32 %v138_v30 }
 0x12a   :  { %v298_v31 = vpop.eup %297 }
 0x12b   :  { %v300_v32 = vpop.eup %299  ;;  %149 = vst [vmem:[#allocation7 + $0x8] sm:$0xff] %v298_v31 }
 0x12c   :  { %148 = vst [vmem:[#allocation7] sm:$0xff] %v300_v32  ;;  %v202_v33 = vpack.c.bf16 %v298_v31, %v300_v32 }
 0x12d   :  { %356 = shalt.err (!%p353_p6)
}
 0x12e   :  { %s357_s21 = scalar_lea.hbm %s500_s3, 256 }
 0x12f   :  { %p358_p7 = scmp.ne.s32.totalorder %s500_s3, %s357_s21  ;;  %p361_p8 = scmp.lt.u32.totalorder %s357_s21, %s500_s3 }
 0x131   :  { %p363_p9 = pnand %p361_p8, %p358_p7 }
 0x133   :  { %366 = shalt.err (!%p363_p9)
}
 0x134   :  { %171 = dma.vmem_to_hbm [thread:$0]  %s166_s16, 256, %s500_s3, [#allocation4], %s398_s25, %s398_s25, %s399_s26   ;;  %203 = vst [vmem:[#allocation8] sm:$0xff] %v202_v33  }
 0x135   :  { %s367_s30 = scalar_lea.vmem %s463_s18, 128  ;;  %p372_p11 = scmp.lt.s32.totalorder %s463_s18, %s463_s18 }
 0x136   :  { %p368_p10 = scmp.ne.s32.totalorder %s463_s18, %s367_s30  ;;  %p373_p12 = scmp.lt.s32.totalorder %s367_s30, %s367_s30 }
 0x138   :  { %p374_p13 = por %p373_p12, %p372_p11 }
 0x13a   :  { %p375_p0 = pnand %p374_p13, %p368_p10 }
 0x13c   :  { %378 = shalt.err (!%p375_p0)
}
 0x13d   :  { %s379_s7 = scalar_lea.hbm %s501_s4, 128 }
 0x13e   :  { %p380_p1 = scmp.ne.s32.totalorder %s501_s4, %s379_s7  ;;  %p383_p2 = scmp.lt.u32.totalorder %s379_s7, %s501_s4 }
 0x140   :  { %p385_p3 = pnand %p383_p2, %p380_p1 }
 0x142   :  { %388 = shalt.err (!%p385_p3)
}
 0x143   :  { %s403_s3 = smov 64   ;;  %s404_s25 = smov 4  }
 0x144   :  { %183 = dma.vmem_to_hbm [thread:$0]  %s463_s18, 128, %s501_s4, [#allocation9], %s403_s3, %s403_s3, %s404_s25  }
 0x145   :  { %393 = dma.done.wait [#allocation4], 256  }
 0x146   :  { %394 = vsyncadd [#allocation4], 4294967040 }
 0x147   :  { %395 = dma.done.wait [#allocation9], 128  }
 0x148   :  { %396 = vsyncadd [#allocation9], 4294967168 }
 0x149   :  { %190 = vsyncpa [#allocation3], 1 }
 0x14a   :  { %191 = vsyncpa [#allocation6], 1 }
 0x14b   :  { %192 = vsyncpa [#allocation4], 1 }
 0x14c   :  { %193 = vsyncpa [#allocation9], 1 }

</bundles_post_ra>
